<compile_context>
chip_gen: v5e
topology: v5e:2x2
jax: 0.10.0
libtpu: 0.0.40
codegen_flags: <defaults>
</compile_context>

<pallas_src>
import functools

import jax
import jax.numpy as jnp
from jax.experimental import pallas as pl
from jax.experimental.pallas import tpu as pltpu

_MIB = 1024 * 1024
# Pipeline-buffer budget that is safe on every generation (v7x has only 64 MiB
# of physical VMEM; leave headroom for compiler internals).
_BLOCK_BUDGET_BYTES = 40 * _MIB


def _vmem_limit_bytes(resident_bytes):
    # Explicit scoped-VMEM budget: actual footprint + margin, clamped so it
    # never exceeds what v7x can physically provide.
    return int(min(max(resident_bytes + 8 * _MIB, 16 * _MIB), 48 * _MIB))


def channel_gate_kernel(x_ref, w1t_ref, b1_ref, w2t_ref, b2_ref, o_ref, *, inv_hw):
    """Single pass: x_ref (Nb, C, HWp), weights (C, C) transposed, bias (1, C)."""
    x = x_ref[...]                                                    # (Nb, C, HWp)
    # AdaptiveAvgPool2d(1): f32-accumulated spatial sum / true HW.
    pooled = jnp.sum(x, axis=-1, dtype=jnp.float32) * inv_hw          # (Nb, C)
    # 1x1 convs on the pooled vector == lane-dense row matmuls.
    h = jnp.dot(pooled, w1t_ref[...], preferred_element_type=jnp.float32) + b1_ref[...]
    h = jnp.maximum(h, 0.0)
    g = jnp.dot(h, w2t_ref[...], preferred_element_type=jnp.float32) + b2_ref[...]
    g = jax.nn.sigmoid(g)                                             # (Nb, C)
    # Scale x by the gate without materializing an f32 copy of the big tile.
    o_ref[...] = (x * g[:, :, None].astype(x.dtype)).astype(o_ref.dtype)


def channel_gate_tiled_kernel(x_ref, w1t_ref, b1_ref, w2t_ref, b2_ref, o_ref,
                              sum_ref, gate_ref, *, inv_hw):
    """Two-phase HW-tiled variant: grid = (N, phase, HW_tiles).

    phase 0: accumulate per-channel spatial sum into sum_ref (1, C).
    phase 1: compute the gate once (t == 0), scale every (1, C, THW) tile.
    """
    phase = pl.program_id(1)
    t = pl.program_id(2)

    @pl.when(jnp.logical_and(phase == 0, t == 0))
    def _():
        sum_ref[...] = jnp.zeros_like(sum_ref)

    @pl.when(phase == 0)
    def _():
        sum_ref[...] += jnp.sum(x_ref[...], axis=-1, dtype=jnp.float32)

    @pl.when(jnp.logical_and(phase == 1, t == 0))
    def _():
        pooled = sum_ref[...] * inv_hw                                # (1, C)
        h = jnp.dot(pooled, w1t_ref[...], preferred_element_type=jnp.float32) + b1_ref[...]
        h = jnp.maximum(h, 0.0)
        g = jnp.dot(h, w2t_ref[...], preferred_element_type=jnp.float32) + b2_ref[...]
        gate_ref[...] = jax.nn.sigmoid(g)

    @pl.when(phase == 1)
    def _():
        x = x_ref[...]                                                # (1, C, THW)
        g = gate_ref[...][:, :, None].astype(x.dtype)
        o_ref[...] = (x * g).astype(o_ref.dtype)


def channel_gate(x, w1, b1, w2, b2, *, max_block_bytes=_BLOCK_BUDGET_BYTES):
    """x: (N, C, H, W). w1/w2: (C_out, C_in) 1x1-conv weights, b1/b2: (C,)."""
    N, C, H, W = x.shape
    HW = H * W
    HWp = -(-HW // 128) * 128                 # pad spatial axis to 128 lanes
    itemsize = jnp.dtype(x.dtype).itemsize
    inv_hw = 1.0 / float(HW)

    x_flat = x.reshape(N, C, HW)
    if HWp != HW:
        x_flat = jnp.pad(x_flat, ((0, 0), (0, 0), (0, HWp - HW)))

    # Lane-dense weight layout: (C_in, C_out) matrices + (1, C) bias rows.
    w1t = jnp.asarray(w1, jnp.float32).T
    w2t = jnp.asarray(w2, jnp.float32).T
    b1r = jnp.asarray(b1, jnp.float32).reshape(1, C)
    b2r = jnp.asarray(b2, jnp.float32).reshape(1, C)

    weights_bytes = 2 * (2 * C * C * 4 + 2 * C * 4)   # double-buffered residents
    per_n_bytes = 4 * C * HWp * itemsize              # x + out, double-buffered

    if per_n_bytes + weights_bytes <= max_block_bytes:
        # ---- single pass: whole (nb, C, HWp) slab per grid step ----
        nb = 1
        for cand in range(N, 0, -1):
            if N % cand == 0 and cand * per_n_bytes + weights_bytes <= max_block_bytes:
                nb = cand
                break
        resident = nb * per_n_bytes + weights_bytes
        kernel = functools.partial(channel_gate_kernel, inv_hw=inv_hw)
        out_flat = pl.pallas_call(
            kernel,
            out_shape=jax.ShapeDtypeStruct((N, C, HWp), x.dtype),
            grid_spec=pltpu.PrefetchScalarGridSpec(
                num_scalar_prefetch=0,
                grid=(N // nb,),
                in_specs=[
                    pl.BlockSpec((nb, C, HWp), lambda n: (n, 0, 0)),
                    pl.BlockSpec((C, C), lambda n: (0, 0)),
                    pl.BlockSpec((1, C), lambda n: (0, 0)),
                    pl.BlockSpec((C, C), lambda n: (0, 0)),
                    pl.BlockSpec((1, C), lambda n: (0, 0)),
                ],
                out_specs=pl.BlockSpec((nb, C, HWp), lambda n: (n, 0, 0)),
            ),
            compiler_params=pltpu.CompilerParams(
                dimension_semantics=("parallel",),
                vmem_limit_bytes=_vmem_limit_bytes(resident),
            ),
        )(x_flat, w1t, b1r, w2t, b2r)
    else:
        # ---- two-phase HW-tiled fallback (block too big for VMEM, e.g. v7x) ----
        thw = 128
        cand = 128
        while cand <= HWp:
            if HWp % cand == 0 and 4 * C * cand * itemsize + weights_bytes <= max_block_bytes:
                thw = cand
            cand += 128
        n_tiles = HWp // thw
        resident = 4 * C * thw * itemsize + weights_bytes + 2 * C * 4
        kernel = functools.partial(channel_gate_tiled_kernel, inv_hw=inv_hw)
        out_flat = pl.pallas_call(
            kernel,
            out_shape=jax.ShapeDtypeStruct((N, C, HWp), x.dtype),
            grid_spec=pltpu.PrefetchScalarGridSpec(
                num_scalar_prefetch=0,
                grid=(N, 2, n_tiles),
                in_specs=[
                    pl.BlockSpec((1, C, thw), lambda n, p, t: (n, 0, t)),
                    pl.BlockSpec((C, C), lambda n, p, t: (0, 0)),
                    pl.BlockSpec((1, C), lambda n, p, t: (0, 0)),
                    pl.BlockSpec((C, C), lambda n, p, t: (0, 0)),
                    pl.BlockSpec((1, C), lambda n, p, t: (0, 0)),
                ],
                # During phase 0 the output block index stays at tile 0 so no
                # unwritten blocks are ever flushed; phase 1 writes every tile.
                out_specs=pl.BlockSpec((1, C, thw), lambda n, p, t: (n, 0, t * p)),
                scratch_shapes=[
                    pltpu.VMEM((1, C), jnp.float32),   # running spatial sum
                    pltpu.VMEM((1, C), jnp.float32),   # gate
                ],
            ),
            compiler_params=pltpu.CompilerParams(
                dimension_semantics=("parallel", "arbitrary", "arbitrary"),
                vmem_limit_bytes=_vmem_limit_bytes(resident),
            ),
        )(x_flat, w1t, b1r, w2t, b2r)

    if HWp != HW:
        out_flat = out_flat[:, :, :HW]
    return out_flat.reshape(N, C, H, W)


def channel_gate_ref(x, w1, b1, w2, b2):
    """Pure-JAX reference matching the PyTorch forward."""
    pooled = jnp.mean(x, axis=(2, 3))                       # (N, C)
    h = jnp.maximum(pooled @ w1.T + b1, 0.0)                # (N, C)
    g = jax.nn.sigmoid(h @ w2.T + b2)                       # (N, C)
    return x * g[:, :, None, None]


if __name__ == "__main__":
    N, C, H, W = 2, 4, 16, 16

    key = jax.random.PRNGKey(0)
    kx, kw1, kb1, kw2, kb2 = jax.random.split(key, 5)

    x = jax.random.normal(kx, (N, C, H, W), dtype=jnp.float32)
    # Conv2d(C, C, 1) weights are (C_out, C_in, 1, 1); keep as (C, C) + (C,).
    w1 = jax.random.normal(kw1, (C, C), dtype=jnp.float32) * 0.5
    b1 = jax.random.normal(kb1, (C,), dtype=jnp.float32) * 0.1
    w2 = jax.random.normal(kw2, (C, C), dtype=jnp.float32) * 0.5
    b2 = jax.random.normal(kb2, (C,), dtype=jnp.float32) * 0.1

    ref = channel_gate_ref(x, w1, b1, w2, b2)

    # Fast path: fused single-pass kernel (batched over N in one grid step).
    out = jax.block_until_ready(channel_gate(x, w1, b1, w2, b2))
    assert out.shape == (N, C, H, W)
    assert jnp.allclose(out, ref, atol=1e-5, rtol=1e-5), "single-pass mismatch"

    # Also exercise the two-phase HW-tiled fallback (used when the single-pass
    # block would not fit VMEM, e.g. large feature maps on v7x) by forcing a
    # tiny block budget.
    out_tiled = jax.block_until_ready(
        channel_gate(x, w1, b1, w2, b2, max_block_bytes=4096))
    assert jnp.allclose(out_tiled, ref, atol=1e-5, rtol=1e-5), "tiled mismatch"

    print("KERNEL_OK")
</pallas_src>

<mosaic_0001>
module attributes {stable_mosaic.version = 11 : i64} {
  func.func @channel_gate_kernel(%arg0: i32, %arg1: memref<2x4x256xf32, #tpu.memory_space<vmem>>, %arg2: memref<4x4xf32, #tpu.memory_space<vmem>>, %arg3: memref<1x4xf32, #tpu.memory_space<vmem>>, %arg4: memref<4x4xf32, #tpu.memory_space<vmem>>, %arg5: memref<1x4xf32, #tpu.memory_space<vmem>>, %arg6: memref<2x4x256xf32, #tpu.memory_space<vmem>>) attributes {dimension_semantics = [#tpu.dimension_semantics<parallel>], iteration_bounds = array<i64: 1>, scalar_prefetch = 0 : i64, scratch_operands = 0 : i64, tpu.core_type = #tpu.core_type<tc>, window_params = [{transform_indices = @transform_0, window_bounds = array<i64: 2, 4, 256>}, {pipeline_mode = #tpu.pipeline_mode<synchronous>, transform_indices = @transform_1, window_bounds = array<i64: 4, 4>}, {pipeline_mode = #tpu.pipeline_mode<synchronous>, transform_indices = @transform_2, window_bounds = array<i64: 1, 4>}, {pipeline_mode = #tpu.pipeline_mode<synchronous>, transform_indices = @transform_3, window_bounds = array<i64: 4, 4>}, {pipeline_mode = #tpu.pipeline_mode<synchronous>, transform_indices = @transform_4, window_bounds = array<i64: 1, 4>}, {transform_indices = @transform_5, window_bounds = array<i64: 2, 4, 256>}]} {
    %c0 = arith.constant 0 : index
    %c0_0 = arith.constant 0 : index
    %c0_1 = arith.constant 0 : index
    %0 = vector.load %arg1[%c0, %c0_0, %c0_1] : memref<2x4x256xf32, #tpu.memory_space<vmem>>, vector<2x4x256xf32>
    %cst = arith.constant dense<0.000000e+00> : vector<2x4xf32>
    %1 = vector.multi_reduction <add>, %0, %cst [2] : vector<2x4x256xf32> to vector<2x4xf32>
    %cst_2 = arith.constant 3.906250e-03 : f32
    %2 = vector.broadcast %cst_2 : f32 to vector<2x4xf32>
    %3 = arith.mulf %1, %2 : vector<2x4xf32>
    %c0_3 = arith.constant 0 : index
    %c0_4 = arith.constant 0 : index
    %4 = vector.load %arg2[%c0_3, %c0_4] : memref<4x4xf32, #tpu.memory_space<vmem>>, vector<4x4xf32>
    %cst_5 = arith.constant dense<0.000000e+00> : vector<2x4xf32>
    %5 = tpu.matmul %3, %4, %cst_5 {dimension_numbers = #tpu.dot_dimension_numbers<[1], [0], [0], [1], [0, 0, 1, 1], [], []>} : vector<2x4xf32>, vector<4x4xf32>, vector<2x4xf32> -> vector<2x4xf32>
    %c0_6 = arith.constant 0 : index
    %c0_7 = arith.constant 0 : index
    %6 = vector.load %arg3[%c0_6, %c0_7] : memref<1x4xf32, #tpu.memory_space<vmem>>, vector<1x4xf32>
    %7 = vector.broadcast %6 : vector<1x4xf32> to vector<2x4xf32>
    %8 = arith.addf %5, %7 : vector<2x4xf32>
    %cst_8 = arith.constant 0.000000e+00 : f32
    %9 = vector.broadcast %cst_8 : f32 to vector<2x4xf32>
    %10 = arith.maximumf %8, %9 : vector<2x4xf32>
    %c0_9 = arith.constant 0 : index
    %c0_10 = arith.constant 0 : index
    %11 = vector.load %arg4[%c0_9, %c0_10] : memref<4x4xf32, #tpu.memory_space<vmem>>, vector<4x4xf32>
    %cst_11 = arith.constant dense<0.000000e+00> : vector<2x4xf32>
    %12 = tpu.matmul %10, %11, %cst_11 {dimension_numbers = #tpu.dot_dimension_numbers<[1], [0], [0], [1], [0, 0, 1, 1], [], []>} : vector<2x4xf32>, vector<4x4xf32>, vector<2x4xf32> -> vector<2x4xf32>
    %c0_12 = arith.constant 0 : index
    %c0_13 = arith.constant 0 : index
    %13 = vector.load %arg5[%c0_12, %c0_13] : memref<1x4xf32, #tpu.memory_space<vmem>>, vector<1x4xf32>
    %14 = vector.broadcast %13 : vector<1x4xf32> to vector<2x4xf32>
    %15 = arith.addf %12, %14 : vector<2x4xf32>
    %16 = arith.negf %15 : vector<2x4xf32>
    %17 = math.exp %16 : vector<2x4xf32>
    %cst_14 = arith.constant 1.000000e+00 : f32
    %18 = vector.broadcast %cst_14 : f32 to vector<2x4xf32>
    %19 = arith.addf %18, %17 : vector<2x4xf32>
    %20 = arith.divf %18, %19 : vector<2x4xf32>
    %21 = vector.shape_cast %20 : vector<2x4xf32> to vector<2x4x1xf32>
    %22 = vector.broadcast %21 : vector<2x4x1xf32> to vector<2x4x256xf32>
    %23 = arith.mulf %0, %22 : vector<2x4x256xf32>
    %c0_15 = arith.constant 0 : index
    %c0_16 = arith.constant 0 : index
    %c0_17 = arith.constant 0 : index
    %24 = vector.load %arg6[%c0_15, %c0_16, %c0_17] : memref<2x4x256xf32, #tpu.memory_space<vmem>>, vector<2x4x256xf32>
    tpu.vector_store %arg6[%c0_15, %c0_16, %c0_17], %23 {strides = array<i32>} : memref<2x4x256xf32, #tpu.memory_space<vmem>>, vector<2x4x256xf32>,
    return
  }
  func.func @transform_0(%arg0: i32) -> (i32, i32, i32) {
    %c0_i32 = arith.constant 0 : i32
    %c0_i32_0 = arith.constant 0 : i32
    %c0_i32_1 = arith.constant 0 : i32
    return %arg0, %c0_i32, %c0_i32_0 : i32, i32, i32
  }
  func.func @transform_1(%arg0: i32) -> (i32, i32) {
    %c0_i32 = arith.constant 0 : i32
    %c0_i32_0 = arith.constant 0 : i32
    %c0_i32_1 = arith.constant 0 : i32
    return %c0_i32, %c0_i32_0 : i32, i32
  }
  func.func @transform_2(%arg0: i32) -> (i32, i32) {
    %c0_i32 = arith.constant 0 : i32
    %c0_i32_0 = arith.constant 0 : i32
    %c0_i32_1 = arith.constant 0 : i32
    return %c0_i32, %c0_i32_0 : i32, i32
  }
  func.func @transform_3(%arg0: i32) -> (i32, i32) {
    %c0_i32 = arith.constant 0 : i32
    %c0_i32_0 = arith.constant 0 : i32
    %c0_i32_1 = arith.constant 0 : i32
    return %c0_i32, %c0_i32_0 : i32, i32
  }
  func.func @transform_4(%arg0: i32) -> (i32, i32) {
    %c0_i32 = arith.constant 0 : i32
    %c0_i32_0 = arith.constant 0 : i32
    %c0_i32_1 = arith.constant 0 : i32
    return %c0_i32, %c0_i32_0 : i32, i32
  }
  func.func @transform_5(%arg0: i32) -> (i32, i32, i32) {
    %c0_i32 = arith.constant 0 : i32
    %c0_i32_0 = arith.constant 0 : i32
    %c0_i32_1 = arith.constant 0 : i32
    return %arg0, %c0_i32, %c0_i32_0 : i32, i32, i32
  }
}

</mosaic_0001>

<bundles_post_ra>
// kernel: tpu_custom_call.1
= control target key start
LH: loop header
LB: loop body
LE: loop exit
PB: predicated region body
PF: predicated region fallthrough
CT: control target
= control target key end

     0   :  { %10 = vsyncpa [#allocation3], 0  ;;  %s429_s0 = inlined_call_operand.hbm [shape: f32[2,4,256], index: 0, kind: input, shape index: {}]   ;;  %s430_s1 = inlined_call_operand.hbm [shape: f32[4,4], index: 1, kind: input, shape index: {}]   ;;  %s431_s2 = inlined_call_operand.vmem [shape: f32[1,4], index: 2, kind: input, shape index: {}]   ;;  %s432_s3 = inlined_call_operand.hbm [shape: f32[4,4], index: 3, kind: input, shape index: {}]   ;;  %s433_s4 = inlined_call_operand.vmem [shape: f32[1,4], index: 4, kind: input, shape index: {}]   ;;  %s434_s5 = inlined_call_operand.hbm [shape: f32[2,4,256], index: 5, kind: output, shape index: {}]  }
   0x1   :  { %11 = vsyncpa [#allocation6], 0  ;;  %s31_s20 = sshll.u32 %s430_s1, 4  ;;  %s32_s20 = int_to_ptr.hbm [resolvable:$true] %s31_s20 }
   0x2   :  { %12 = vsyncpa [#allocation4], 0  ;;  %s354_s21 = smov [#allocation5]   ;;  %s17_s25 = sshll.u32 %s429_s0, 4  ;;  %s18_s25 = int_to_ptr.hbm [resolvable:$true] %s17_s25 }
   0x3   :  { %s33_s22 = sshll.u32 %s354_s21, 4  ;;  %s355_s26 = smov [#allocation2]   ;;  %s34_s22 = int_to_ptr.vmem [resolvable:$true] %s33_s22 }
   0x4   :  { %36 = dma.hbm_to_vmem [thread:$0]  %s32_s20, 64, %s34_s22, [#allocation6]  }
   0x5   :  { %s19_s27 = sshll.u32 %s355_s26, 4  ;;  %s356_s28 = smov 128   ;;  %s20_s27 = int_to_ptr.vmem [resolvable:$true] %s19_s27 }
   0x6   :  { %s357_s29 = smov 8   ;;  %s44_s6 = sshll.u32 %s432_s3, 4  ;;  %s45_s6 = int_to_ptr.hbm [resolvable:$true] %s44_s6 }
   0x7   :  { %25 = dma.hbm_to_vmem [thread:$0]  %s18_s25, 256, %s20_s27, [#allocation3], %s356_s28, %s356_s28, %s357_s29  }
   0x8   :  { %s358_s7 = smov [#allocation7]  }
   0x9   :  { %s46_s8 = sshll.u32 %s358_s7, 4  ;;  %s47_s8 = int_to_ptr.vmem [resolvable:$true] %s46_s8 }
   0xa   :  { %49 = dma.hbm_to_vmem [thread:$0]  %s45_s6, 64, %s47_s8, [#allocation6]  }
   0xb   :  { %348 = dma.done.wait [#allocation3], 256  }
   0xc   :  { %349 = vsyncadd [#allocation3], 4294967040 }
   0xd   :  { %350 = dma.done.wait [#allocation6], 128  }
   0xe   :  { %351 = vsyncadd [#allocation6], 4294967168  ;;  %v403_v0 = vld [vmem:[#allocation2] sm:$0xff]  ;;  %v405_v1 = vld [vmem:[#allocation2 + $0x8] sm:$0xff]  ;;  %vm79_vm0 = vcmask 1043456   ;;  %v99_v14 = vlaneseq  ;;  %vm103_vm1 = vcmask 1041409  }
   0xf   :  { %68 = vst [vmem:[#allocation1] ss:$2 sm:$0xff] %v403_v0  ;;  %v92_v12 = vld [vmem:[#allocation5] sm:$0xf]  ;;  %vm105_vm2 = vcmask 31744   ;;  %s218_s13 = sshll.u32 %s434_s5, 4  ;;  %s219_s13 = int_to_ptr.hbm [resolvable:$true] %s218_s13 }
  0x10   :  { %72 = vst [vmem:[#allocation1 + $0x10] ss:$2 sm:$0xff] %v405_v1  ;;  %232 = vmatpush.msk.msra.mxu0 %vm79_vm0, %v92_v12  ;;  %v100_v15 = vand.u32 127, %v99_v14  ;;  %v132_v22 = vld [vmem:[#allocation7] sm:$0xf]  ;;  %v184_v27 = vshrl.u32 %v99_v14, 7 }
  0x11   :  { %234 = vmatpush.msk.msra.mxu1 %vm79_vm0, %v132_v22  ;;  %v246_v23 = vld [vmem:[%s431_s2] ss:$0 sm:$0xff]  ;;  %v359_v46 = vmov 839922192   ;;  %s360_s2 = smov [#allocation8]  }
  0x12   :  { %244 = vset.pattern.permute.xlu1 %v184_v27  ;;  %245 = vset.pattern.permute.xlu0 %v184_v27  ;;  %v247_v28 = vld [vmem:[%s433_s4] ss:$0 sm:$0xff]  ;;  %v199_v47 = vunpack.c.l.s4 %v359_v46  ;;  %s216_s4 = sshll.u32 %s360_s2, 4  ;;  %s217_s4 = int_to_ptr.vmem [resolvable:$true] %s216_s4 }
  0x14   :  { %v200_v48 = vunpack.c.0.s8 %v199_v47 }
  0x16   :  { %v69_v2 = vld.sshfl [vmem:[#allocation1] sm:$0xff pattern:$0x75316420]  ;;  %v70_v3 = vld.sshfl [vmem:[#allocation1 + $0x8] sm:$0xff pattern:$0x75316420] }
  0x17   :  { %v80_v4 = vsel %vm79_vm0, %v69_v2, 0.0  ;;  %v81_v5 = vsel %vm79_vm0, %v70_v3, 0.0  ;;  %v73_v7 = vld.sshfl [vmem:[#allocation1 + $0x10] sm:$0xff pattern:$0x75316420] }
  0x18   :  { %v82_v6 = vadd.f32 %v81_v5, %v80_v4  ;;  %v74_v8 = vld.sshfl [vmem:[#allocation1 + $0x18] sm:$0xff pattern:$0x75316420]  ;;  %v85_v9 = vsel %vm79_vm0, %v73_v7, 0.0 }
  0x19   :  { %v86_v10 = vsel %vm79_vm0, %v74_v8, 0.0 }
  0x1a   :  { %83 = vadd.xlane.f32.xlu0 %v82_v6  ;;  %v87_v11 = vadd.f32 %v86_v10, %v85_v9 }
  0x22   :  { %88 = vadd.xlane.f32.xlu0 %v87_v11 }
  0x8d   :  { %v84_v13 = vpop.xlane.xlu0 %83 }
  0x8e   :  { %v90_v16 = vmul.f32 0.00390625, %v84_v13 }
  0x90   :  { %v101_v19 = vperm.slane %v90_v16, %v100_v15 }
  0x95   :  { %v89_v17 = vpop.xlane.xlu0 %88 }
  0x96   :  { %v91_v18 = vmul.f32 0.00390625, %v89_v17 }
  0x98   :  { %v102_v20 = vperm.slane %v91_v18, %v100_v15 }
  0x9a   :  { %v104_v21 = vsel %vm103_vm1, %v102_v20, %v101_v19 }
  0x9b   :  { %233 = vmatmul.msk.f32.vlgmr.msra.gmra.mxu0 %vm105_vm2, %v104_v21 }
 0x118   :  { %v128_v24 = vpop.f32.mrf.mxu0 }
 0x119   :  { %v129_v25 = vadd.f32 %v246_v23, %v128_v24 }
 0x11b   :  { %v131_v26 = vmax.f32 %v129_v25, 0.0 }
 0x11d   :  { %235 = vmatmul.msk.f32.vlgmr.msra.gmra.mxu1 %vm105_vm2, %v131_v26 }
 0x19a   :  { %v160_v29 = vpop.f32.mrf.mxu1 }
 0x19b   :  { %v161_v30 = vadd.f32 %v247_v28, %v160_v29 }
 0x19d   :  { %v236_v31 = vmul.f32 -1.442695, %v161_v30 }
 0x19f   :  { %248 = vpow2.f32 %v236_v31 }
 0x1a5   :  { %v249_v32 = vpop.eup %248 }
 0x1a6   :  { %v166_v33 = vadd.f32 1.0, %v249_v32 }
 0x1a8   :  { %250 = vrcp.f32 %v166_v33  ;;  %v178_v37 = vand.u32 2147483648, %v166_v33  ;;  %v176_v39 = vand.u32 2147483647, %v166_v33  ;;  %vm172_vm4 = vweird.f32 %v166_v33 }
 0x1aa   :  { %v179_v41 = vor.u32 1.1754944e-38, %v178_v37  ;;  %vm177_vm6 = vcmp.eq.f32.partialorder %v176_v39, 8.507059e+37 }
 0x1ae   :  { %v251_v34 = vpop.eup %250 }
 0x1af   :  { %v168_v35 = vmul.f32 %v251_v34, %v166_v33  ;;  %vm173_vm3 = vweird.f32 %v251_v34 }
 0x1b0   :  { %vm174_vm5 = vmor %vm172_vm4, %vm173_vm3 }
 0x1b1   :  { %v169_v36 = vsub.f32 1.0, %v168_v35 }
 0x1b3   :  { %v170_v38 = vmul.f32 %v251_v34, %v169_v36 }
 0x1b5   :  { %v171_v40 = vadd.f32 %v251_v34, %v170_v38 }
 0x1b7   :  { %v175_v42 = vsel %vm174_vm5, %v251_v34, %v171_v40 }
 0x1b8   :  { %v180_v43 = vsel %vm177_vm6, %v179_v41, %v175_v42 }
 0x1b9   :  { %v182_v44 = vperm.slane %v180_v43, 0  ;;  %v189_v45 = vperm.slane %v180_v43, 1 }
 0x1bb   :  { %187 = vperm.xlu1 %244, %v182_v44  }
 0x1c3   :  { %194 = vperm.xlu1 %244, %v189_v45  }
 0x22d   :  { %v188_v49 = vpop.permute.xlu1 %187 }
 0x22e   :  { %v201_v50 = vperm.slane %v188_v49, %v200_v48 }
 0x230   :  { %v208_v51 = vmul.f32 %v201_v50, %v403_v0 }
 0x232   :  { %210 = vst [vmem:[#allocation8] sm:$0xff] %v208_v51 }
 0x235   :  { %v195_v52 = vpop.permute.xlu1 %194 }
 0x236   :  { %v205_v53 = vperm.slane %v195_v52, %v200_v48 }
 0x238   :  { %v209_v54 = vmul.f32 %v205_v53, %v405_v1 }
 0x23a   :  { %211 = vst [vmem:[#allocation8 + $0x8] sm:$0xff] %v209_v54 }
 0x23b   :  { %224 = dma.vmem_to_hbm [thread:$0]  %s217_s4, 256, %s219_s13, [#allocation4], %s356_s28, %s356_s28, %s357_s29  }
 0x23c   :  { %352 = dma.done.wait [#allocation4], 256  }
 0x23d   :  { %353 = vsyncadd [#allocation4], 4294967040 }
 0x23e   :  { %229 = vsyncpa [#allocation3], 1 }
 0x23f   :  { %230 = vsyncpa [#allocation6], 1 }
 0x240   :  { %231 = vsyncpa [#allocation4], 1 }

</bundles_post_ra>
